<compile_context>
chip_gen: v7x
topology: tpu7x:2x2x1
jax: 0.10.0
libtpu: 0.0.40
codegen_flags: <defaults>
</compile_context>

<pallas_src>
import functools
from typing import NamedTuple

import numpy as np
import jax
import jax.numpy as jnp
from jax.experimental import pallas as pl
from jax.experimental.pallas import tpu as pltpu


def _round_up(x: int, m: int) -> int:
    return (x + m - 1) // m * m


class ActorDims(NamedTuple):
    s: int       # state_dim
    a: int       # action_dim
    s_r: int     # state_dim rounded to 8 (sublane-aligned W1 block height)
    lanes: int   # slab lane width (hidden/action dims padded to 128)
    rows: int    # total slab rows


# ----------------------------------------------------------------------------- kernel


def actor_kernel(x_ref, p_ref, o_ref, *, s_r, lanes, a):
    """One (tb, s_r) batch tile of the fused actor forward.

    Param slab row layout (all 8-aligned offsets, `lanes` = 128 columns):
      [0, s_r)                 W1  (state normalization pre-folded)
      [s_r, s_r+8)             b1  in row s_r, rest zeros
      [s_r+8, s_r+8+lanes)     Wc = W2 @ W3  (layers 2+3 folded, no ReLU between them)
      [.., +8)                 bc = b2 @ W3 + b3
    """
    r_b1 = s_r
    r_wc = s_r + 8
    r_bc = r_wc + lanes

    x = x_ref[...]                                                     # (tb, s_r)

    # Layer 1 (+ folded state normalization) + ReLU.
    h = jnp.dot(x, p_ref[0:s_r, :],
                preferred_element_type=jnp.float32) + p_ref[r_b1:r_b1 + 1, :]
    h = jnp.maximum(h, 0.0)                                            # (tb, lanes)

    # Folded layers 2+3 (Linear -> Linear; build_mlp drops the last ReLU of enc_s).
    y = jnp.dot(h, p_ref[r_wc:r_wc + lanes, :],
                preferred_element_type=jnp.float32) + p_ref[r_bc:r_bc + 1, :]

    # tanh + narrow store: only the first `a` lanes are real actions.
    o_ref[...] = jnp.tanh(y[:, :a]).astype(o_ref.dtype)


# ----------------------------------------------------------------------------- packing


def pack_actor_params(params):
    """Fold normalization into layer 1 and layers 2+3 into one matrix; pack one f32 slab.

    All folds are done in float64 (numpy) then cast to f32 to preserve the 1e-5 tolerance.
    Note: like the PyTorch original, std entries of exactly 0 produce inf/nan.
    """
    w1 = np.asarray(params["w1"], np.float64)           # (S, H1)
    b1 = np.asarray(params["b1"], np.float64)           # (H1,)
    w2 = np.asarray(params["w2"], np.float64)           # (H1, H2)
    b2 = np.asarray(params["b2"], np.float64)           # (H2,)
    w3 = np.asarray(params["w3"], np.float64)           # (H2, A)
    b3 = np.asarray(params["b3"], np.float64)           # (A,)
    avg = np.asarray(params["state_avg"], np.float64)   # (S,)
    std = np.asarray(params["state_std"], np.float64)   # (S,)

    # (x - avg)/std @ W1 + b1  ==  x @ (W1/std[:,None]) + (b1 - (avg/std) @ W1)
    w1f = w1 / std[:, None]
    b1f = b1 - (avg / std) @ w1

    # (h @ W2 + b2) @ W3 + b3  ==  h @ (W2 @ W3) + (b2 @ W3 + b3)   (no ReLU in between)
    wc = w2 @ w3
    bc = b2 @ w3 + b3

    s, h1 = w1.shape
    a = w3.shape[1]
    s_r = _round_up(s, 8)
    lanes = max(_round_up(h1, 128), _round_up(a, 128))
    rows = s_r + 8 + lanes + 8

    slab = np.zeros((rows, lanes), np.float32)
    slab[:s, :h1] = w1f
    slab[s_r, :h1] = b1f
    r_wc = s_r + 8
    slab[r_wc:r_wc + h1, :a] = wc
    slab[r_wc + lanes, :a] = bc

    dims = ActorDims(s=s, a=a, s_r=s_r, lanes=lanes, rows=rows)
    return jnp.asarray(slab), dims


# ----------------------------------------------------------------------------- wrapper


@functools.partial(jax.jit, static_argnums=(2,), static_argnames=("block_b",))
def actor_forward(state, slab, dims: ActorDims, *, block_b: int = 1024):
    """state: (B, state_dim) f32. slab/dims: from pack_actor_params. Returns (B, action_dim)."""
    b = state.shape[0]
    b8 = _round_up(b, 8)

    # >= 2 grid steps for moderate/large batches (v7x megacore on the "parallel" axis) and
    # near-minimal batch padding (tb ~= ceil(B / n_tiles) rounded to 8, not round_up(B, tb)).
    n_tiles = max(pl.cdiv(b8, block_b), 2 if b8 >= 16 else 1)
    tb = _round_up(pl.cdiv(b8, n_tiles), 8)
    b_pad = n_tiles * tb

    x = state.astype(jnp.float32)
    if b_pad != b or dims.s_r != dims.s:
        # tiny pad (sublane rounding only); padded rows give finite outputs, sliced off below.
        x = jnp.zeros((b_pad, dims.s_r), jnp.float32).at[:b, :dims.s].set(x)

    kernel = functools.partial(actor_kernel, s_r=dims.s_r, lanes=dims.lanes, a=dims.a)

    cost = pl.CostEstimate(
        flops=2 * b_pad * dims.lanes * (dims.s_r + dims.lanes),
        transcendentals=b_pad * dims.a,
        bytes_accessed=4 * (b_pad * dims.s_r + dims.rows * dims.lanes + b_pad * dims.a),
    )

    out = pl.pallas_call(
        kernel,
        out_shape=jax.ShapeDtypeStruct((b_pad, dims.a), jnp.float32),
        grid=(n_tiles,),
        in_specs=[
            # unpadded input tile: full last dim (no 128 requirement), 8x less input DMA
            pl.BlockSpec((tb, dims.s_r), lambda i: (i, 0)),
            # constant block index -> the ~80 KiB param slab stays VMEM-resident across the grid
            pl.BlockSpec((dims.rows, dims.lanes), lambda i: (0, 0)),
        ],
        # narrow output tile: full last dim (A), 16x fewer output HBM bytes, no trailing slice
        out_specs=pl.BlockSpec((tb, dims.a), lambda i: (i, 0)),
        compiler_params=pltpu.CompilerParams(
            dimension_semantics=("parallel",),
        ),
        cost_estimate=cost,
    )(x, slab)

    return out[:b]


# ----------------------------------------------------------------------------- init / reference


def init_actor_params(key, state_dim, dims, action_dim):
    """nn.Linear-style init. Weights stored (in_dim, out_dim); biases (out_dim,)."""
    layer_dims = [state_dim, *dims, action_dim]
    params = {
        "state_avg": jnp.zeros((state_dim,), jnp.float32),
        "state_std": jnp.ones((state_dim,), jnp.float32),
    }
    for i in range(len(layer_dims) - 1):
        fan_in, fan_out = layer_dims[i], layer_dims[i + 1]
        key, kw, kb = jax.random.split(key, 3)
        bound = 1.0 / (fan_in ** 0.5)
        params[f"w{i + 1}"] = jax.random.uniform(
            kw, (fan_in, fan_out), jnp.float32, minval=-bound, maxval=bound
        )
        params[f"b{i + 1}"] = jax.random.uniform(
            kb, (fan_out,), jnp.float32, minval=-bound, maxval=bound
        )
    return params


def actor_forward_ref(state, params):
    """Pure-JAX reference matching the PyTorch module exactly."""
    x = (state - params["state_avg"]) / params["state_std"]
    h = jnp.maximum(x @ params["w1"] + params["b1"], 0.0)   # enc_s: Linear + ReLU
    h = h @ params["w2"] + params["b2"]                     # enc_s: Linear (no ReLU)
    h = h @ params["w3"] + params["b3"]                     # dec_a_avg
    return jnp.tanh(h)


# ----------------------------------------------------------------------------- demo

if __name__ == "__main__":
    key = jax.random.PRNGKey(0)

    batch = 8
    state_dim = 16
    hidden_dims = (32, 32)
    action_dim = 8

    k_params, k_state, k_avg, k_std = jax.random.split(key, 4)
    params = init_actor_params(k_params, state_dim, hidden_dims, action_dim)
    # non-trivial normalization statistics to exercise the normalization fold
    params["state_avg"] = 0.1 * jax.random.normal(k_avg, (state_dim,), jnp.float32)
    params["state_std"] = 1.0 + 0.1 * jax.random.uniform(k_std, (state_dim,), jnp.float32)

    state = jax.random.normal(k_state, (batch, state_dim), jnp.float32)

    slab, d = pack_actor_params(params)
    out = actor_forward(state, slab, d)
    jax.block_until_ready(out)

    ref = actor_forward_ref(state, params)
    assert out.shape == (batch, action_dim)
    assert jnp.allclose(out, ref, atol=1e-5, rtol=1e-5), "mismatch vs JAX reference"

    print("KERNEL_OK")
</pallas_src>

<mosaic_0001>
module attributes {stable_mosaic.version = 11 : i64} {
  func.func @actor_kernel(%arg0: i32, %arg1: memref<8x16xf32, #tpu.memory_space<vmem>>, %arg2: memref<160x128xf32, #tpu.memory_space<vmem>>, %arg3: memref<8x8xf32, #tpu.memory_space<vmem>>) attributes {dimension_semantics = [#tpu.dimension_semantics<parallel>], iteration_bounds = array<i64: 1>, scalar_prefetch = 0 : i64, scratch_operands = 0 : i64, tpu.core_type = #tpu.core_type<tc>, window_params = [{transform_indices = @transform_0, window_bounds = array<i64: 8, 16>}, {pipeline_mode = #tpu.pipeline_mode<synchronous>, transform_indices = @transform_1, window_bounds = array<i64: 160, 128>}, {transform_indices = @transform_2, window_bounds = array<i64: 8, 8>}]} {
    %c0 = arith.constant 0 : index
    %c0_0 = arith.constant 0 : index
    %0 = vector.load %arg1[%c0, %c0_0] : memref<8x16xf32, #tpu.memory_space<vmem>>, vector<8x16xf32>
    %c0_1 = arith.constant 0 : index
    %c0_2 = arith.constant 0 : index
    %1 = vector.load %arg2[%c0_1, %c0_2] : memref<160x128xf32, #tpu.memory_space<vmem>>, vector<16x128xf32>
    %cst = arith.constant dense<0.000000e+00> : vector<8x128xf32>
    %2 = tpu.matmul %0, %1, %cst {dimension_numbers = #tpu.dot_dimension_numbers<[1], [0], [0], [1], [0, 0, 1, 1], [], []>} : vector<8x16xf32>, vector<16x128xf32>, vector<8x128xf32> -> vector<8x128xf32>
    %c16 = arith.constant 16 : index
    %c0_3 = arith.constant 0 : index
    %3 = vector.load %arg2[%c16, %c0_3] : memref<160x128xf32, #tpu.memory_space<vmem>>, vector<1x128xf32>
    %4 = vector.broadcast %3 : vector<1x128xf32> to vector<8x128xf32>
    %5 = arith.addf %2, %4 : vector<8x128xf32>
    %cst_4 = arith.constant 0.000000e+00 : f32
    %6 = vector.broadcast %cst_4 : f32 to vector<8x128xf32>
    %7 = arith.maximumf %5, %6 : vector<8x128xf32>
    %c24 = arith.constant 24 : index
    %c0_5 = arith.constant 0 : index
    %8 = vector.load %arg2[%c24, %c0_5] : memref<160x128xf32, #tpu.memory_space<vmem>>, vector<128x128xf32>
    %cst_6 = arith.constant dense<0.000000e+00> : vector<8x128xf32>
    %9 = tpu.matmul %7, %8, %cst_6 {dimension_numbers = #tpu.dot_dimension_numbers<[1], [0], [0], [1], [0, 0, 1, 1], [], []>} : vector<8x128xf32>, vector<128x128xf32>, vector<8x128xf32> -> vector<8x128xf32>
    %c152 = arith.constant 152 : index
    %c0_7 = arith.constant 0 : index
    %10 = vector.load %arg2[%c152, %c0_7] : memref<160x128xf32, #tpu.memory_space<vmem>>, vector<1x128xf32>
    %11 = vector.broadcast %10 : vector<1x128xf32> to vector<8x128xf32>
    %12 = arith.addf %9, %11 : vector<8x128xf32>
    %13 = vector.extract_strided_slice %12 {offsets = [0, 0], sizes = [8, 8], strides = [1, 1]} : vector<8x128xf32> to vector<8x8xf32>
    %14 = math.tanh %13 : vector<8x8xf32>
    %c0_8 = arith.constant 0 : index
    %c0_9 = arith.constant 0 : index
    %15 = vector.load %arg3[%c0_8, %c0_9] : memref<8x8xf32, #tpu.memory_space<vmem>>, vector<8x8xf32>
    tpu.vector_store %arg3[%c0_8, %c0_9], %14 {strides = array<i32>} : memref<8x8xf32, #tpu.memory_space<vmem>>, vector<8x8xf32>,
    return
  }
  func.func @transform_0(%arg0: i32) -> (i32, i32) {
    %c0_i32 = arith.constant 0 : i32
    %c0_i32_0 = arith.constant 0 : i32
    return %arg0, %c0_i32 : i32, i32
  }
  func.func @transform_1(%arg0: i32) -> (i32, i32) {
    %c0_i32 = arith.constant 0 : i32
    %c0_i32_0 = arith.constant 0 : i32
    %c0_i32_1 = arith.constant 0 : i32
    return %c0_i32, %c0_i32_0 : i32, i32
  }
  func.func @transform_2(%arg0: i32) -> (i32, i32) {
    %c0_i32 = arith.constant 0 : i32
    %c0_i32_0 = arith.constant 0 : i32
    return %arg0, %c0_i32 : i32, i32
  }
}

</mosaic_0001>

<bundles_post_ra>
// kernel: actor_forward.1
= control target key start
LH: loop header
LB: loop body
LE: loop exit
PB: predicated region body
PF: predicated region fallthrough
CT: control target
= control target key end

     0   :  { %7 = vsyncpa [#allocation3], 0  ;;  %s471_s0 = inlined_call_operand.hbm [shape: f32[8,16], index: 0, kind: input, shape index: {}]   ;;  %s472_s1 = inlined_call_operand.hbm [shape: f32[160,128], index: 1, kind: input, shape index: {}]   ;;  %s473_s2 = inlined_call_operand.hbm [shape: f32[8,8], index: 2, kind: output, shape index: {}]  }
   0x1   :  { %8 = vsyncpa [#allocation6], 0 }
   0x2   :  { %9 = vsyncpa [#allocation4], 0  ;;  %s405_s9 = smov [#allocation2]   ;;  %s406_s11 = smov [#allocation5]  }
   0x3   :  { %s16_s10 = sshll.u32 %s405_s9, 4  ;;  %s25_s12 = sshll.u32 %s406_s11, 4  ;;  %s17_s10 = int_to_ptr.vmem [resolvable:$true] %s16_s10  ;;  %s428_s12 = int_to_ptr.vmem [resolvable:$true] %s25_s12 }
   0x4   :  { %s333_s15 = scalar_lea.hbm %s471_s0, 128 }
   0x5   :  { %p334_p0 = scmp.ne.s32.totalorder %s471_s0, %s333_s15  ;;  %p337_p1 = scmp.lt.u32.totalorder %s333_s15, %s471_s0 }
   0x7   :  { %p339_p2 = pnand %p337_p1, %p334_p0 }
   0x9   :  { %342 = shalt.err (!%p339_p2)
}
   0xa   :  { %s343_s20 = scalar_lea.vmem %s17_s10, 128  ;;  %p348_p4 = scmp.lt.s32.totalorder %s17_s10, %s17_s10 }
   0xb   :  { %p344_p3 = scmp.ne.s32.totalorder %s17_s10, %s343_s20  ;;  %p349_p5 = scmp.lt.s32.totalorder %s343_s20, %s343_s20 }
   0xd   :  { %p350_p6 = por %p349_p5, %p348_p4 }
   0xf   :  { %p351_p7 = pnand %p350_p6, %p344_p3 }
  0x11   :  { %354 = shalt.err (!%p351_p7)
}
  0x12   :  { %19 = dma.hbm_to_vmem [thread:$0]  %s471_s0, 128, %s17_s10, [#allocation3]  }
  0x13   :  { %s355_s25 = scalar_lea.hbm %s472_s1, 2560 }
  0x14   :  { %p356_p8 = scmp.ne.s32.totalorder %s472_s1, %s355_s25  ;;  %p359_p9 = scmp.lt.u32.totalorder %s355_s25, %s472_s1 }
  0x16   :  { %p361_p10 = pnand %p359_p9, %p356_p8 }
  0x18   :  { %364 = shalt.err (!%p361_p10)
}
  0x19   :  { %s365_s30 = scalar_lea.vmem %s428_s12, 2560  ;;  %p370_p12 = scmp.lt.s32.totalorder %s428_s12, %s428_s12 }
  0x1a   :  { %p366_p11 = scmp.ne.s32.totalorder %s428_s12, %s365_s30  ;;  %p371_p13 = scmp.lt.s32.totalorder %s365_s30, %s365_s30 }
  0x1c   :  { %p372_p0 = por %p371_p13, %p370_p12 }
  0x1e   :  { %p373_p1 = pnand %p372_p0, %p366_p11 }
  0x20   :  { %376 = shalt.err (!%p373_p1)
}
  0x21   :  { %s407_s0 = smov 128   ;;  %s408_s3 = smov 8  }
  0x22   :  { %31 = dma.hbm_to_vmem [thread:$0]  %s472_s1, 2560, %s428_s12, [#allocation6], %s407_s0, %s407_s0, %s408_s3  }
  0x23   :  { %399 = dma.done.wait [#allocation3], 128  }
  0x24   :  { %400 = vsyncadd [#allocation3], 4294967168 }
  0x25   :  { %401 = dma.done.wait [#allocation6], 2560  }
  0x26   :  { %402 = vsyncadd [#allocation6], 4294964736  ;;  %v409_v0 = vmov 0.0|0.0   ;;  %vm410_vm0 = vmmov 0   ;;  %v411_v1 = vmov 0.0   ;;  %v39_v2 = vld [vmem:[#allocation5] sm:$0xff] }
  0x27   :  { %296 = vmatprep.subr.bf16.mxu0 %v409_v0  ;;  %258 = vmatprep.mubr.msk.f32.mxu0 %vm410_vm0, %v411_v1  ;;  %v40_v3 = vld [vmem:[#allocation5 + $0x8] sm:$0xff]  ;;  %v121_v5 = vld [vmem:[#allocation5 + $0x18] sm:$0xff]  ;;  %v122_v6 = vld [vmem:[#allocation5 + $0x20] sm:$0xff]  ;;  %vm46_vm1 = vcmask 130048   ;;  %s412_s1 = smov [#allocation7]   ;;  %vm213_vm2 = vcmask 64512  }
  0x28   :  { %299 = vmatprep.subr.bf16.mxu1 %v409_v0  ;;  %293 = vmatprep.mubr.msk.f32.mxu1 %vm410_vm0, %v411_v1  ;;  %v297_v4 = vpack.c.bf16 %v40_v3, %v39_v2  ;;  %v123_v7 = vld [vmem:[#allocation5 + $0x28] sm:$0xff]  ;;  %v300_v8 = vpack.c.bf16 %v122_v6, %v121_v5  ;;  %v124_v9 = vld [vmem:[#allocation5 + $0x30] sm:$0xff]  ;;  %v38_v10 = vld [vmem:[#allocation2] sm:$0xff]  ;;  %s221_s6 = sshll.u32 %s412_s1, 4  ;;  %s222_s6 = int_to_ptr.vmem [resolvable:$true] %s221_s6 }
  0x29   :  { %v303_v11 = vpack.c.bf16 %v124_v9, %v123_v7  ;;  %v125_v12 = vld [vmem:[#allocation5 + $0x38] sm:$0xff]  ;;  %v126_v13 = vld [vmem:[#allocation5 + $0x40] sm:$0xff]  ;;  %v127_v15 = vld [vmem:[#allocation5 + $0x48] sm:$0xff]  ;;  %s377_s7 = scalar_lea.vmem %s222_s6, 128  ;;  %p382_p3 = scmp.lt.s32.totalorder %s222_s6, %s222_s6 }
  0x2a   :  { %298 = vmatpush3.bf16.msra.mxu0 %v297_v4  ;;  %301 = vmatpush3.bf16.msra.mxu1 %v300_v8  ;;  %v306_v14 = vpack.c.bf16 %v126_v13, %v125_v12  ;;  %v128_v16 = vld [vmem:[#allocation5 + $0x50] sm:$0xff]  ;;  %v129_v18 = vld [vmem:[#allocation5 + $0x58] sm:$0xff]  ;;  %v130_v19 = vld [vmem:[#allocation5 + $0x60] sm:$0xff]  ;;  %p378_p2 = scmp.ne.s32.totalorder %s222_s6, %s377_s7  ;;  %p383_p4 = scmp.lt.s32.totalorder %s377_s7, %s377_s7 }
  0x2b   :  { %302 = vmatprep.subr.bf16.mxu1 %v409_v0  ;;  %v309_v17 = vpack.c.bf16 %v128_v16, %v127_v15  ;;  %v312_v20 = vpack.c.bf16 %v130_v19, %v129_v18  ;;  %v131_v21 = vld [vmem:[#allocation5 + $0x68] sm:$0xff]  ;;  %v132_v22 = vld [vmem:[#allocation5 + $0x70] sm:$0xff]  ;;  %v133_v24 = vld [vmem:[#allocation5 + $0x78] sm:$0xff] }
  0x2c   :  { %v315_v23 = vpack.c.bf16 %v132_v22, %v131_v21  ;;  %v134_v25 = vld [vmem:[#allocation5 + $0x80] sm:$0xff]  ;;  %v135_v27 = vld [vmem:[#allocation5 + $0x88] sm:$0xff]  ;;  %v136_v28 = vld [vmem:[#allocation5 + $0x90] sm:$0xff]  ;;  %p384_p5 = por %p383_p4, %p382_p3 }
  0x2d   :  { %259 = vmatmul.mubr.msk.f32.vlgmr.msra.gmra.mrb[0].mxu0 %vm46_vm1, %v38_v10  ;;  %v318_v26 = vpack.c.bf16 %v134_v25, %v133_v24  ;;  %v321_v29 = vpack.c.bf16 %v136_v28, %v135_v27  ;;  %v231_v30 = vld [vmem:[#allocation5 + $0x10] ss:$0 sm:$0xff]  ;;  %v233_v35 = vld [vmem:[#allocation5 + $0x98] ss:$0 sm:$0xff] }
  0x2e   :  { %304 = vmatpush3.bf16.msra.mxu1 %v303_v11  ;;  %p385_p6 = pnand %p384_p5, %p378_p2 }
  0x2f   :  { %305 = vmatprep.subr.bf16.mxu1 %v409_v0 }
  0x32   :  { %307 = vmatpush3.bf16.msra.mxu1 %v306_v14 }
  0x33   :  { %308 = vmatprep.subr.bf16.mxu1 %v409_v0 }
  0x36   :  { %310 = vmatpush3.bf16.msra.mxu1 %v309_v17 }
  0x37   :  { %311 = vmatprep.subr.bf16.mxu1 %v409_v0 }
  0x3a   :  { %313 = vmatpush3.bf16.msra.mxu1 %v312_v20 }
  0x3b   :  { %314 = vmatprep.subr.bf16.mxu1 %v409_v0 }
  0x3e   :  { %316 = vmatpush3.bf16.msra.mxu1 %v315_v23 }
  0x3f   :  { %317 = vmatprep.subr.bf16.mxu1 %v409_v0 }
  0x42   :  { %319 = vmatpush3.bf16.msra.mxu1 %v318_v26 }
  0x43   :  { %320 = vmatprep.subr.bf16.mxu1 %v409_v0 }
  0x46   :  { %322 = vmatpush3.bf16.msra.mxu1 %v321_v29 }
 0x100   :  { %v116_v31 = vpop.f32.mrb[0].mxu0 }
 0x101   :  { %v117_v32 = vadd.f32 %v231_v30, %v116_v31  ;;  %v260_v33 = vpop.f32.mrb[1].mxu0 }
 0x103   :  { %v120_v34 = vmax.f32 %v117_v32, 0.0 }
 0x105   :  { %294 = vmatmul.mubr.f32.vlgmr.msra.gmra.mrb[0].mxu1 %v120_v34 }
 0x1d8   :  { %v208_v36 = vpop.f32.mrb[0].mxu1 }
 0x1d9   :  { %v209_v37 = vadd.f32 %v233_v35, %v208_v36  ;;  %v295_v38 = vpop.f32.mrb[1].mxu1 }
 0x1db   :  { %331 = vtanh.f32 %v209_v37 }
 0x1e5   :  { %v332_v39 = vpop.eup %331 }
 0x1e6   :  { %214 = vst.msk [vmem:[#allocation7] sm:$0xff] %vm213_vm2, %v332_v39 }
 0x1e7   :  { %388 = shalt.err (!%p385_p6)
}
 0x1e8   :  { %s389_s10 = scalar_lea.hbm %s473_s2, 128 }
 0x1e9   :  { %p390_p7 = scmp.ne.s32.totalorder %s473_s2, %s389_s10  ;;  %p393_p8 = scmp.lt.u32.totalorder %s389_s10, %s473_s2 }
 0x1eb   :  { %p395_p9 = pnand %p393_p8, %p390_p7 }
 0x1ed   :  { %398 = shalt.err (!%p395_p9)
}
 0x1ee   :  { %224 = dma.vmem_to_hbm [thread:$0]  %s222_s6, 128, %s473_s2, [#allocation4]  }
 0x1ef   :  { %403 = dma.done.wait [#allocation4], 128  }
 0x1f0   :  { %404 = vsyncadd [#allocation4], 4294967168 }
 0x1f1   :  { %228 = vsyncpa [#allocation3], 1 }
 0x1f2   :  { %229 = vsyncpa [#allocation6], 1 }
 0x1f3   :  { %230 = vsyncpa [#allocation4], 1 }

</bundles_post_ra>
